<compile_context>
chip_gen: v5e
topology: v5e:2x2
jax: 0.10.0
libtpu: 0.0.40
codegen_flags: <defaults>
</compile_context>

<pallas_src>
import functools

import jax
import jax.numpy as jnp
from jax.experimental import pallas as pl
from jax.experimental.pallas import tpu as pltpu


def _qnet_kernel(x_ref, w1_ref, b1_ref, w2_ref, b2_ref, o_ref):
    # Two MXU matmuls (bf16 inputs, f32 accumulation) + VPU bias/ReLU epilogue,
    # all on a single VMEM-resident batch tile.
    x = x_ref[...]
    h = jnp.dot(x, w1_ref[...], preferred_element_type=jnp.float32) + b1_ref[...]
    h = jnp.maximum(h, 0.0)                                   # F.relu (f32, VPU)
    h = h.astype(w2_ref.dtype)                                # back to bf16 for MXU
    y = jnp.dot(h, w2_ref[...], preferred_element_type=jnp.float32) + b2_ref[...]
    o_ref[...] = y.astype(o_ref.dtype)


@functools.partial(jax.jit, static_argnames=("block_b", "compute_dtype"))
def linear_qnet_forward(x, w1, b1, w2, b2, *, block_b=4096,
                        compute_dtype=jnp.bfloat16):
    """Forward pass of Linear_QNet: relu(x @ W1 + b1) @ W2 + b2.

    x:  (B, in)          float32 (cast to `compute_dtype` for the MXU)
    w1: (in, hidden)     (PyTorch weight.T)
    b1: (1, hidden)
    w2: (hidden, out)    (PyTorch weight.T)
    b2: (1, out)
    """
    B, in_sz = x.shape
    _, hid_sz = w1.shape
    _, out_sz = w2.shape

    # Halve HBM traffic on the dominant (x) stream; biases stay f32 for the
    # f32 epilogue.
    xc = x.astype(compute_dtype)
    w1c = w1.astype(compute_dtype)
    w2c = w2.astype(compute_dtype)
    b1c = b1.astype(jnp.float32)
    b2c = b2.astype(jnp.float32)

    if B <= block_b:
        # Small batch: whole array as one block (legal even if B % 8 != 0).
        tb = B
        grid = (1,)
    else:
        tb = block_b                      # multiple of 8 -> dense sublane stores
        grid = (pl.cdiv(B, tb),)

    return pl.pallas_call(
        _qnet_kernel,
        out_shape=jax.ShapeDtypeStruct((B, out_sz), x.dtype),
        grid=grid,
        in_specs=[
            pl.BlockSpec((tb, in_sz), lambda i: (i, 0)),      # batch-tiled x
            pl.BlockSpec((in_sz, hid_sz), lambda i: (0, 0)),  # resident weights
            pl.BlockSpec((1, hid_sz), lambda i: (0, 0)),
            pl.BlockSpec((hid_sz, out_sz), lambda i: (0, 0)),
            pl.BlockSpec((1, out_sz), lambda i: (0, 0)),
        ],
        out_specs=pl.BlockSpec((tb, out_sz), lambda i: (i, 0)),
        compiler_params=pltpu.CompilerParams(
            # Batch tiles are independent -> shard across v7x's 2 TCs.
            dimension_semantics=("parallel",),
        ),
    )(xc, w1c, b1c, w2c, b2c)


def init_params(key, input_size, hidden_size, output_size):
    """Deterministic init matching nn.Linear's U(-1/sqrt(fan_in), 1/sqrt(fan_in))."""
    k1, k2, k3, k4 = jax.random.split(key, 4)
    bound1 = 1.0 / (input_size ** 0.5)
    bound2 = 1.0 / (hidden_size ** 0.5)
    # stored as (in, out) = PyTorch weight.T
    w1 = jax.random.uniform(k1, (input_size, hidden_size), jnp.float32, -bound1, bound1)
    b1 = jax.random.uniform(k2, (1, hidden_size), jnp.float32, -bound1, bound1)
    w2 = jax.random.uniform(k3, (hidden_size, output_size), jnp.float32, -bound2, bound2)
    b2 = jax.random.uniform(k4, (1, output_size), jnp.float32, -bound2, bound2)
    return w1, b1, w2, b2


def _reference(x, w1, b1, w2, b2, compute_dtype=jnp.bfloat16):
    # Plain-JAX reference using the same bf16-in / f32-accumulate recipe.
    xh = x.astype(compute_dtype)
    h = jnp.dot(xh, w1.astype(compute_dtype),
                preferred_element_type=jnp.float32) + b1
    h = jnp.maximum(h, 0.0).astype(compute_dtype)
    y = jnp.dot(h, w2.astype(compute_dtype),
                preferred_element_type=jnp.float32) + b2
    return y.astype(x.dtype)


if __name__ == "__main__":
    input_size, hidden_size, output_size = 16, 32, 4

    key = jax.random.PRNGKey(0)
    kx, kp, kx2 = jax.random.split(key, 3)
    w1, b1, w2, b2 = init_params(kp, input_size, hidden_size, output_size)

    # --- small batch (single block, matches the original module's use case) ---
    batch = 8
    x = jax.random.normal(kx, (batch, input_size), jnp.float32)
    out = linear_qnet_forward(x, w1, b1, w2, b2)
    jax.block_until_ready(out)
    ref = _reference(x, w1, b1, w2, b2)
    assert out.shape == (batch, output_size)
    assert jnp.allclose(out, ref, atol=1e-3, rtol=1e-3)

    # --- larger batch: exercises batch tiling / pipelining (grid > 1) ---
    big_batch = 8192
    xb = jax.random.normal(kx2, (big_batch, input_size), jnp.float32)
    out_b = linear_qnet_forward(xb, w1, b1, w2, b2)
    jax.block_until_ready(out_b)
    ref_b = _reference(xb, w1, b1, w2, b2)
    assert out_b.shape == (big_batch, output_size)
    assert jnp.allclose(out_b, ref_b, atol=1e-3, rtol=1e-3)

    print("KERNEL_OK")
</pallas_src>

<mosaic_0001>
module attributes {stable_mosaic.version = 11 : i64} {
  func.func @_qnet_kernel(%arg0: i32, %arg1: memref<8x16xbf16, #tpu.memory_space<vmem>>, %arg2: memref<16x32xbf16, #tpu.memory_space<vmem>>, %arg3: memref<1x32xf32, #tpu.memory_space<vmem>>, %arg4: memref<32x4xbf16, #tpu.memory_space<vmem>>, %arg5: memref<1x4xf32, #tpu.memory_space<vmem>>, %arg6: memref<8x4xf32, #tpu.memory_space<vmem>>) attributes {dimension_semantics = [#tpu.dimension_semantics<parallel>], iteration_bounds = array<i64: 1>, scalar_prefetch = 0 : i64, scratch_operands = 0 : i64, tpu.core_type = #tpu.core_type<tc>, window_params = [{transform_indices = @transform_0, window_bounds = array<i64: 8, 16>}, {pipeline_mode = #tpu.pipeline_mode<synchronous>, transform_indices = @transform_1, window_bounds = array<i64: 16, 32>}, {pipeline_mode = #tpu.pipeline_mode<synchronous>, transform_indices = @transform_2, window_bounds = array<i64: 1, 32>}, {pipeline_mode = #tpu.pipeline_mode<synchronous>, transform_indices = @transform_3, window_bounds = array<i64: 32, 4>}, {pipeline_mode = #tpu.pipeline_mode<synchronous>, transform_indices = @transform_4, window_bounds = array<i64: 1, 4>}, {transform_indices = @transform_5, window_bounds = array<i64: 8, 4>}]} {
    %c0 = arith.constant 0 : index
    %c0_0 = arith.constant 0 : index
    %0 = vector.load %arg1[%c0, %c0_0] : memref<8x16xbf16, #tpu.memory_space<vmem>>, vector<8x16xbf16>
    %c0_1 = arith.constant 0 : index
    %c0_2 = arith.constant 0 : index
    %1 = vector.load %arg2[%c0_1, %c0_2] : memref<16x32xbf16, #tpu.memory_space<vmem>>, vector<16x32xbf16>
    %cst = arith.constant dense<0.000000e+00> : vector<8x32xf32>
    %2 = tpu.matmul %0, %1, %cst {dimension_numbers = #tpu.dot_dimension_numbers<[1], [0], [0], [1], [0, 0, 1, 1], [], []>} : vector<8x16xbf16>, vector<16x32xbf16>, vector<8x32xf32> -> vector<8x32xf32>
    %c0_3 = arith.constant 0 : index
    %c0_4 = arith.constant 0 : index
    %3 = vector.load %arg3[%c0_3, %c0_4] : memref<1x32xf32, #tpu.memory_space<vmem>>, vector<1x32xf32>
    %4 = vector.broadcast %3 : vector<1x32xf32> to vector<8x32xf32>
    %5 = arith.addf %2, %4 : vector<8x32xf32>
    %cst_5 = arith.constant 0.000000e+00 : f32
    %6 = vector.broadcast %cst_5 : f32 to vector<8x32xf32>
    %7 = arith.maximumf %5, %6 : vector<8x32xf32>
    %8 = arith.truncf %7 : vector<8x32xf32> to vector<8x32xbf16>
    %c0_6 = arith.constant 0 : index
    %c0_7 = arith.constant 0 : index
    %9 = vector.load %arg4[%c0_6, %c0_7] : memref<32x4xbf16, #tpu.memory_space<vmem>>, vector<32x4xbf16>
    %cst_8 = arith.constant dense<0.000000e+00> : vector<8x4xf32>
    %10 = tpu.matmul %8, %9, %cst_8 {dimension_numbers = #tpu.dot_dimension_numbers<[1], [0], [0], [1], [0, 0, 1, 1], [], []>} : vector<8x32xbf16>, vector<32x4xbf16>, vector<8x4xf32> -> vector<8x4xf32>
    %c0_9 = arith.constant 0 : index
    %c0_10 = arith.constant 0 : index
    %11 = vector.load %arg5[%c0_9, %c0_10] : memref<1x4xf32, #tpu.memory_space<vmem>>, vector<1x4xf32>
    %12 = vector.broadcast %11 : vector<1x4xf32> to vector<8x4xf32>
    %13 = arith.addf %10, %12 : vector<8x4xf32>
    %c0_11 = arith.constant 0 : index
    %c0_12 = arith.constant 0 : index
    %14 = vector.load %arg6[%c0_11, %c0_12] : memref<8x4xf32, #tpu.memory_space<vmem>>, vector<8x4xf32>
    tpu.vector_store %arg6[%c0_11, %c0_12], %13 {strides = array<i32>} : memref<8x4xf32, #tpu.memory_space<vmem>>, vector<8x4xf32>,
    return
  }
  func.func @transform_0(%arg0: i32) -> (i32, i32) {
    %c0_i32 = arith.constant 0 : i32
    %c0_i32_0 = arith.constant 0 : i32
    return %arg0, %c0_i32 : i32, i32
  }
  func.func @transform_1(%arg0: i32) -> (i32, i32) {
    %c0_i32 = arith.constant 0 : i32
    %c0_i32_0 = arith.constant 0 : i32
    %c0_i32_1 = arith.constant 0 : i32
    return %c0_i32, %c0_i32_0 : i32, i32
  }
  func.func @transform_2(%arg0: i32) -> (i32, i32) {
    %c0_i32 = arith.constant 0 : i32
    %c0_i32_0 = arith.constant 0 : i32
    %c0_i32_1 = arith.constant 0 : i32
    return %c0_i32, %c0_i32_0 : i32, i32
  }
  func.func @transform_3(%arg0: i32) -> (i32, i32) {
    %c0_i32 = arith.constant 0 : i32
    %c0_i32_0 = arith.constant 0 : i32
    %c0_i32_1 = arith.constant 0 : i32
    return %c0_i32, %c0_i32_0 : i32, i32
  }
  func.func @transform_4(%arg0: i32) -> (i32, i32) {
    %c0_i32 = arith.constant 0 : i32
    %c0_i32_0 = arith.constant 0 : i32
    %c0_i32_1 = arith.constant 0 : i32
    return %c0_i32, %c0_i32_0 : i32, i32
  }
  func.func @transform_5(%arg0: i32) -> (i32, i32) {
    %c0_i32 = arith.constant 0 : i32
    %c0_i32_0 = arith.constant 0 : i32
    return %arg0, %c0_i32 : i32, i32
  }
}

</mosaic_0001>

<bundles_post_ra>
// kernel: linear_qnet_forward.1
= control target key start
LH: loop header
LB: loop body
LE: loop exit
PB: predicated region body
PF: predicated region fallthrough
CT: control target
= control target key end

     0   :  { %vm34_vm0 = vcmask 130048   ;;  %vm73_vm1 = vcmask 261120   ;;  %vm90_vm2 = vcmask 31744   ;;  %s166_s1 = inlined_call_operand.vmem [shape: bf16[16,32], index: 1, kind: input, shape index: {}]   ;;  %s167_s0 = inlined_call_operand.vmem [shape: bf16[8,16], index: 0, kind: input, shape index: {}]   ;;  %s168_s2 = inlined_call_operand.vmem [shape: f32[1,32], index: 2, kind: input, shape index: {}]   ;;  %s169_s4 = inlined_call_operand.vmem [shape: f32[1,4], index: 4, kind: input, shape index: {}]   ;;  %s170_s3 = inlined_call_operand.vmem [shape: bf16[32,4], index: 3, kind: input, shape index: {}]   ;;  %s171_s5 = inlined_call_operand.vmem [shape: f32[8,4], index: 5, kind: output, shape index: {}]  }
   0x1   :  { %v110_v0 = vld [vmem:[%s166_s1] sm:$0xff]  ;;  %v112_v2 = vld [vmem:[%s170_s3 + $0x8] sm:$0xff] }
   0x2   :  { %45 = vmatpush.bf16.msra.mxu0 %v110_v0  ;;  %v21_v1 = vld [vmem:[%s167_s0] sm:$0xf]  ;;  %83 = vmatpush.bf16.msra.mxu1 %v112_v2 }
   0x3   :  { %v111_v3 = vld [vmem:[%s170_s3] sm:$0xff] }
   0x4   :  { %v113_v4 = vld [vmem:[%s168_s2] ss:$0 sm:$0xff] }
   0x5   :  { %100 = vmatmul.msk.bf16.vlgmr.msra.gmra.mxu0 %vm34_vm0, %v21_v1  ;;  %v114_v10 = vld [vmem:[%s169_s4] ss:$0 sm:$0xff] }
   0x6   :  { %84 = vmatpush.bf16.msra.mxu1 %v111_v3 }
  0x82   :  { %v47_v5 = vpop.f32.mrf.mxu0 }
  0x83   :  { %v48_v6 = vadd.f32 %v113_v4, %v47_v5 }
  0x85   :  { %v51_v7 = vmax.f32 %v48_v6, 0.0 }
  0x87   :  { %v52_v8 = vpack.c.bf16 %v51_v7, %v51_v7 }
  0x89   :  { %109 = vmatmul.msk.bf16.vlgmr.msra.gmra.mxu1 %vm73_vm1, %v52_v8 }
  0x8a   :  { %v49_v9 = vpop.f32.mrf.mxu0 }
 0x106   :  { %v86_v11 = vpop.f32.mrf.mxu1 }
 0x107   :  { %v87_v12 = vadd.f32 %v114_v10, %v86_v11 }
 0x109   :  { %91 = vst.msk [vmem:[%s171_s5] sm:$0xff] %vm90_vm2, %v87_v12 }
 0x10e   :  { %v88_v13 = vpop.f32.mrf.mxu1 }

</bundles_post_ra>
